<compile_context>
chip_gen: v7x
topology: tpu7x:2x2x1
jax: 0.10.0
libtpu: 0.0.40
codegen_flags: <defaults>
</compile_context>

<pallas_src>
import functools

import numpy as np

import jax
import jax.numpy as jnp
from jax.experimental import pallas as pl
from jax.experimental.pallas import tpu as pltpu


def _round_up(x, m):
    return (x + m - 1) // m * m


def _cdiv(a, b):
    return -(-a // b)


def _sublane_multiple(dtype):
    itemsize = jnp.dtype(dtype).itemsize
    if itemsize >= 4:
        return 8
    if itemsize == 2:
        return 16
    return 32


# --------------------------------------------------------------------------------------
# Pallas kernel: fused (supervised + SimCLR) SupConLoss, one anchor-row tile per grid step.
# --------------------------------------------------------------------------------------
def _supcon_rows_kernel(*refs, m_real, n_views, n_ids, inv_temp, loss_scale,
                        row_tile, have_scale):
    if have_scale:
        anchor_ref, contrast_ref, ids_row_ref, ids_col_ref, scale_ref, out_ref = refs
    else:
        anchor_ref, contrast_ref, ids_row_ref, ids_col_ref, out_ref = refs
        scale_ref = None

    i = pl.program_id(0)

    a = anchor_ref[...]                        # (TR, D), native dtype
    c = contrast_ref[...]                      # (M, D), native dtype (resident)

    # anchor . contrast^T on the MXU, f32 accumulation.
    dots = jax.lax.dot_general(
        a, c, dimension_numbers=(((1,), (1,)), ((), ())),
        preferred_element_type=jnp.float32)                       # (TR, M)

    tr, mcols = dots.shape
    row_g = i * row_tile + jax.lax.broadcasted_iota(jnp.int32, (tr, 1), 0)
    col_j = jax.lax.broadcasted_iota(jnp.int32, (tr, mcols), 1)

    logits_mask = col_j != row_g               # bool: drop the diagonal (self-contrast)
    row_valid = row_g < m_real                 # bool (TR, 1): zero padded anchor rows

    # Row max of the unscaled logits (PyTorch takes the max before scale_factors and the
    # diagonal mask). Dividing by T before/after the max-shift is equivalent, so 1/T is
    # folded into the post-shift multiply below (one fewer full-width VALU pass).
    row_max = jnp.max(dots, axis=1, keepdims=True)
    shifted = dots - row_max
    if have_scale:
        srow = scale_ref[...] * jnp.float32(inv_temp)             # (TR, B) f32
        scale_tile = (jnp.concatenate([srow] * n_views, axis=1)
                      if n_views > 1 else srow)                   # (TR, n_views*B) == (TR, M)
        logits = shifted * scale_tile
    else:
        logits = shifted * jnp.float32(inv_temp)

    z = jnp.sum(jnp.where(logits_mask, jnp.exp(logits), 0.0), axis=1, keepdims=True)
    log_z = jnp.log(z)                                            # (TR, 1)

    cols = []
    for t in range(n_ids):
        ids_r = ids_row_ref[:, t:t + 1]                           # (TR, 1) int32
        ids_c = ids_col_ref[t:t + 1, :]                           # (1, M)  int32
        pos = jnp.logical_and(ids_r == ids_c, logits_mask)        # bool (TR, M)
        s_pos = jnp.sum(jnp.where(pos, logits, 0.0), axis=1, keepdims=True)
        cnt = jnp.sum(jnp.where(pos, 1.0, 0.0), axis=1, keepdims=True)
        denom = jnp.where(cnt < 1e-6, 1.0, cnt)                   # mask_pos_pairs guard
        mean_log_prob_pos = (s_pos - cnt * log_z) / denom
        cols.append(jnp.where(row_valid, jnp.float32(loss_scale) * mean_log_prob_pos, 0.0))

    out_ref[...] = cols[0] if n_ids == 1 else jnp.concatenate(cols, axis=1)


def _pick_row_tiling(m, d, b, feat_bytes, have_scale, sublane, budget=48 * 2**20):
    """Pick (row_tile, n_tiles, vmem_estimate): largest tile that fits the VMEM budget."""
    resident = m * d * feat_bytes + 2 * m * 4           # contrast set + column ids

    def est(rt):
        per_step = (2 * rt * d * feat_bytes             # anchor tile (double-buffered)
                    + 2 * rt * 2 * 4                    # row ids
                    + 2 * rt * 2 * 4                    # output
                    + (2 * rt * b * 4 if have_scale else 0)   # scale rows
                    + 6 * rt * m * 4)                   # f32 (TR, M) intermediates
        return resident + per_step

    rt = _round_up(min(m, 512), sublane)
    while rt > sublane and est(rt) > budget:
        rt = max(sublane, _round_up(rt // 2, sublane))

    n_tiles = _cdiv(m, rt)
    # v7x runs the "parallel" grid axis across 2 TensorCores: prefer an even tile count
    # so neither core idles on the tail tile. No-op on v5e/v6e (single TC).
    if n_tiles > 1 and n_tiles % 2 == 1:
        rt2 = max(sublane, _round_up(_cdiv(m, n_tiles + 1), sublane))
        if _cdiv(m, rt2) % 2 == 0:
            rt = rt2
            n_tiles = _cdiv(m, rt)
    return rt, n_tiles, est(rt)


def _supcon_pallas(contrast, ids_rows, ids_cols, scale_rows, *, n_views,
                   temperature, base_temperature):
    """contrast: (M, D) L2-normalized features (native dtype); ids_rows: (M, n_ids) int32;
    ids_cols: (n_ids, M) int32; scale_rows: (M, B) f32 or None.
    Returns per-anchor-row losses, shape (M_padded, n_ids) f32 (padded rows are zero)."""
    M, D = contrast.shape
    n_ids = ids_rows.shape[1]
    have_scale = scale_rows is not None
    B = scale_rows.shape[1] if have_scale else 0
    feat_bytes = jnp.dtype(contrast.dtype).itemsize
    sublane = _sublane_multiple(contrast.dtype)

    row_tile, n_tiles, vmem_est = _pick_row_tiling(M, D, B, feat_bytes, have_scale, sublane)
    m_rows_pad = row_tile * n_tiles
    pad = m_rows_pad - M

    anchor_p = jnp.pad(contrast, ((0, pad), (0, 0)))                         # (Mp, D)
    ids_rows_p = jnp.pad(ids_rows, ((0, pad), (0, 0)), constant_values=-1)   # (Mp, n_ids)
    operands = [anchor_p, contrast, ids_rows_p, ids_cols]
    if have_scale:
        # Only the (M, B) base columns travel to HBM/VMEM; the (row_tile, M) tile is
        # rebuilt in-kernel. (Could also be bf16 for another 2x on this stream.)
        operands.append(jnp.pad(scale_rows.astype(jnp.float32),
                                ((0, pad), (0, 0)), constant_values=1.0))    # (Mp, B)

    # Cap the scoped-VMEM request below v7x's 64 MiB physical ceiling; the row-tile picker
    # already keeps the estimate under that budget on all generations.
    vmem_limit = int(min(56 * 2**20, max(32 * 2**20, int(vmem_est * 1.25))))

    cost = pl.CostEstimate(
        flops=int(2 * m_rows_pad * M * D + 12 * m_rows_pad * M * n_ids),
        transcendentals=int(m_rows_pad * M + 2 * m_rows_pad),
        bytes_accessed=int(feat_bytes * (m_rows_pad + M) * D
                           + 4 * (m_rows_pad * n_ids + n_ids * M)
                           + (4 * m_rows_pad * B if have_scale else 0)
                           + 4 * m_rows_pad * n_ids),
    )

    kernel = functools.partial(
        _supcon_rows_kernel,
        m_real=M, n_views=n_views, n_ids=n_ids,
        inv_temp=1.0 / temperature,
        loss_scale=-(temperature / base_temperature),
        row_tile=row_tile, have_scale=have_scale)

    def build(resident_mode):
        def resident_spec(shape):
            if resident_mode is None:
                return pl.BlockSpec(shape, lambda i: (0, 0))
            return pl.BlockSpec(shape, lambda i: (0, 0), pipeline_mode=resident_mode)

        in_specs = [
            pl.BlockSpec((row_tile, D), lambda i: (i, 0)),      # anchor row tile (pipelined)
            resident_spec((M, D)),                              # full contrast set (resident)
            pl.BlockSpec((row_tile, n_ids), lambda i: (i, 0)),  # per-row ids
            resident_spec((n_ids, M)),                          # per-column ids (resident)
        ]
        if have_scale:
            in_specs.append(pl.BlockSpec((row_tile, B), lambda i: (i, 0)))  # scale rows

        return pl.pallas_call(
            kernel,
            grid=(n_tiles,),
            in_specs=in_specs,
            out_specs=pl.BlockSpec((row_tile, n_ids), lambda i: (i, 0)),
            out_shape=jax.ShapeDtypeStruct((m_rows_pad, n_ids), jnp.float32),
            compiler_params=pltpu.CompilerParams(
                dimension_semantics=("parallel",),
                vmem_limit_bytes=vmem_limit),
            cost_estimate=cost,
        )

    try:
        # Single-buffer the resident (constant index_map) inputs: they are never re-fetched,
        # so double-buffering them only wastes VMEM.
        out = build(pl.Buffered(1))(*operands)
    except Exception:  # pragma: no cover - older JAX without per-BlockSpec pipeline_mode
        out = build(None)(*operands)
    return out


# --------------------------------------------------------------------------------------
# Phenotype-similarity scale factors (tiny, data-dependent preprocessing -> plain JAX).
# --------------------------------------------------------------------------------------
def _categorical_sim(cat):
    cat = cat.astype(jnp.float32)
    b, f = cat.shape

    def per_feature(col):
        valid = col != -1.0
        nvalid = jnp.sum(valid.astype(jnp.float32))
        conf = nvalid / b
        eq = (col[:, None] == col[None, :]) & valid[:, None] & valid[None, :]
        gate = (nvalid > 1.0).astype(jnp.float32)
        return eq.astype(jnp.float32) * conf * gate

    sims = jax.vmap(per_feature, in_axes=1)(cat)
    return (1.0 + jnp.sum(sims, axis=0)) / f


def _continuous_sim(cont):
    cont = cont.astype(jnp.float32)
    b, f = cont.shape
    eye = jnp.eye(b, dtype=bool)

    def per_feature(col):
        valid = col != -1.0
        vm = valid.astype(jnp.float32)
        nvalid = jnp.sum(vm)
        conf = nvalid / b
        mean = jnp.sum(col * vm) / jnp.maximum(nvalid, 1.0)
        var = jnp.sum(jnp.square(col - mean) * vm) / jnp.maximum(nvalid - 1.0, 1.0)
        std = jnp.sqrt(var) + 1e-6                 # torch.std default is unbiased (ddof=1)
        z = (col - mean) / std
        dist = jnp.where((valid[:, None] & valid[None, :]) & ~eye,
                         jnp.square(z[:, None] - z[None, :]), 0.0)
        gate = (nvalid > 1.0).astype(jnp.float32)
        return jnp.exp(-dist / 2.0) * conf * gate

    sims = jax.vmap(per_feature, in_axes=1)(cont)
    return (1.0 + jnp.sum(sims, axis=0)) / f


def _alpha_threshold(sim, alpha):
    return jnp.where(sim > 1.0, sim * alpha, jnp.where(sim < 1.0, sim / alpha, sim))


def _compute_scale_factors(cat_phenotypes, cont_phenotypes, alpha):
    if cat_phenotypes is None and cont_phenotypes is None:
        return None
    ref = cat_phenotypes if cat_phenotypes is not None else cont_phenotypes
    ps = jnp.ones((ref.shape[0], ref.shape[0]), jnp.float32)
    if cat_phenotypes is not None:
        ps = ps * _alpha_threshold(_categorical_sim(cat_phenotypes), alpha)
    if cont_phenotypes is not None:
        ps = ps * _alpha_threshold(_continuous_sim(cont_phenotypes), alpha)
    return ps


# --------------------------------------------------------------------------------------
# APheSCL forward (world_size == 1).
# --------------------------------------------------------------------------------------
def aphe_scl_loss(features, labels=None, cat_phenotypes=None, cont_phenotypes=None, *,
                  temperature=0.07, base_temperature=0.07, alpha=5.0):
    if features.ndim < 3:
        raise ValueError('`features` needs to be [bsz, n_views, ...]')
    x = features.reshape(features.shape[0], features.shape[1], -1)
    b, v, d = x.shape
    m = b * v

    # L2-normalize along the feature dim (f32 math), keep the native dtype for HBM ingest.
    x32 = x.astype(jnp.float32)
    nrm = jnp.sqrt(jnp.sum(x32 * x32, axis=-1, keepdims=True))
    feats = (x32 / jnp.maximum(nrm, 1e-12)).astype(x.dtype)

    # contrast_feature == torch.cat(torch.unbind(features, dim=1), dim=0)
    contrast = feats.transpose(1, 0, 2).reshape(m, d)

    ids_uns = jnp.tile(jnp.arange(b, dtype=jnp.int32), v)               # eye(B) tiled mask
    if labels is not None:
        ids_sup = jnp.tile(labels.reshape(-1).astype(jnp.int32), v)
        ids_list = [ids_sup, ids_uns]                                   # sup, unsup
    else:
        ids_list = [ids_uns]                                            # unsup only
    ids_rows = jnp.stack(ids_list, axis=1)                              # (M, n_ids)
    ids_cols = jnp.stack(ids_list, axis=0)                              # (n_ids, M)

    scale = _compute_scale_factors(cat_phenotypes, cont_phenotypes, alpha)   # (B, B) or None
    # Row-tiled (M, B) base columns only; the (row_tile, M) tile is rebuilt in-kernel.
    scale_rows = jnp.tile(scale, (v, 1)) if scale is not None else None      # (M, B)

    rows = _supcon_pallas(contrast, ids_rows, ids_cols, scale_rows,
                          n_views=v, temperature=temperature,
                          base_temperature=base_temperature)

    if labels is None:
        return jnp.sum(rows[:, 0]) / m          # SupConLoss(features, None, scale)
    loss_sup = jnp.sum(rows[:, 0]) / m          # SupConLoss(features, labels, scale)
    loss_uns = jnp.sum(rows[:, 1]) / m          # SupConLoss(features, None, scale)
    return loss_sup + loss_uns


# --------------------------------------------------------------------------------------
# Pure references (numpy loops mirror the PyTorch code exactly; SupConLoss ref in JAX).
# --------------------------------------------------------------------------------------
def _ref_categorical_sim(cat):
    b, f = cat.shape
    sim = np.ones((b, b), np.float64)
    for k in range(f):
        col = cat[:, k]
        valid = col != -1
        conf = float(valid.sum()) / b
        if valid.sum() <= 1:
            continue
        fs = np.zeros((b, b), np.float64)
        vi = np.where(valid)[0]
        for i in vi:
            for j in vi:
                if col[i] == col[j]:
                    fs[i, j] = conf
        sim += fs
    return sim / f


def _ref_continuous_sim(cont):
    b, f = cont.shape
    sim = np.ones((b, b), np.float64)
    for k in range(f):
        col = cont[:, k].astype(np.float64)
        valid = col != -1
        conf = float(valid.sum()) / b
        if valid.sum() <= 1:
            continue
        vv = col[valid]
        mean = vv.mean()
        std = vv.std(ddof=1) + 1e-6
        z = (vv - mean) / std
        dist = np.zeros((b, b), np.float64)
        vi = np.where(valid)[0]
        for p, i in enumerate(vi):
            for q, j in enumerate(vi):
                if i != j:
                    dist[i, j] = (z[p] - z[q]) ** 2
        sim += np.exp(-dist / 2.0) * conf
    return sim / f


def _ref_scale_factors(cat, cont, alpha):
    if cat is None and cont is None:
        return None
    b = cat.shape[0] if cat is not None else cont.shape[0]
    ps = np.ones((b, b), np.float64)
    if cat is not None:
        cs = _ref_categorical_sim(np.asarray(cat))
        cs = np.where(cs > 1, cs * alpha, np.where(cs < 1, cs / alpha, cs))
        ps = ps * cs
    if cont is not None:
        cc = _ref_continuous_sim(np.asarray(cont))
        cc = np.where(cc > 1, cc * alpha, np.where(cc < 1, cc / alpha, cc))
        ps = ps * cc
    return ps


def _ref_supcon(features, labels, scale_factors, temperature=0.07, base_temperature=0.07):
    x = features.astype(jnp.float32)
    x = x.reshape(x.shape[0], x.shape[1], -1)
    x = x / jnp.maximum(jnp.sqrt(jnp.sum(x * x, axis=-1, keepdims=True)), 1e-12)
    b, v, _ = x.shape
    m = b * v
    contrast = jnp.concatenate([x[:, k] for k in range(v)], axis=0)
    if labels is None:
        base_mask = jnp.eye(b, dtype=jnp.float32)
    else:
        lab = labels.reshape(-1, 1)
        base_mask = (lab == lab.T).astype(jnp.float32)
    adc = jnp.dot(contrast, contrast.T, precision=jax.lax.Precision.HIGHEST) / temperature
    logits = adc - jnp.max(adc, axis=1, keepdims=True)
    if scale_factors is not None:
        logits = logits * jnp.tile(scale_factors.astype(jnp.float32), (v, v))
    logits_mask = 1.0 - jnp.eye(m, dtype=jnp.float32)
    mask = jnp.tile(base_mask, (v, v)) * logits_mask
    exp_logits = jnp.exp(logits) * logits_mask
    log_prob = logits - jnp.log(jnp.sum(exp_logits, axis=1, keepdims=True))
    mpp = jnp.sum(mask, axis=1)
    mpp = jnp.where(mpp < 1e-6, 1.0, mpp)
    mlpp = jnp.sum(mask * log_prob, axis=1) / mpp
    return jnp.mean(-(temperature / base_temperature) * mlpp)


def _ref_aphe_scl(features, labels, cat, cont, *, temperature=0.07,
                  base_temperature=0.07, alpha=5.0):
    sf_np = _ref_scale_factors(None if cat is None else np.asarray(cat),
                               None if cont is None else np.asarray(cont), alpha)
    sf = None if sf_np is None else jnp.asarray(sf_np, dtype=jnp.float32)
    loss = _ref_supcon(features, labels, sf, temperature, base_temperature)
    if labels is not None:
        loss = loss + _ref_supcon(features, None, sf, temperature, base_temperature)
    return loss


if __name__ == "__main__":
    key = jax.random.PRNGKey(0)
    kf, kl, kc, kq, km = jax.random.split(key, 5)

    B, V, D = 8, 2, 32                                   # bsz, n_views, feature dim
    features = jax.random.normal(kf, (B, V, D), dtype=jnp.float32)
    labels = jax.random.randint(kl, (B,), 0, 3, dtype=jnp.int32)
    cat_ph = jax.random.randint(kc, (B, 3), -1, 3).astype(jnp.float32)   # -1 == missing
    cont_raw = jax.random.normal(kq, (B, 2), dtype=jnp.float32)
    cont_ph = jnp.where(jax.random.bernoulli(km, 0.25, (B, 2)), -1.0, cont_raw)

    checks = [
        ("labels + phenotypes", labels, cat_ph, cont_ph),       # scaled, fused sup+unsup
        ("labels, no phenotypes", labels, None, None),          # have_scale=False path
        ("unsupervised + phenotypes", None, cat_ph, cont_ph),   # single-loss (SimCLR) path
    ]
    for name, lab, cph, qph in checks:
        out = jax.block_until_ready(aphe_scl_loss(features, lab, cph, qph))
        ref = _ref_aphe_scl(features, lab, cph, qph)
        assert jnp.allclose(out, ref, rtol=1e-2, atol=1e-2), (name, out, ref)

    print("KERNEL_OK")
</pallas_src>

<mosaic_0001>
module attributes {stable_mosaic.version = 11 : i64} {
  func.func @_supcon_rows_kernel(%arg0: i32, %arg1: memref<16x32xf32, #tpu.memory_space<vmem>>, %arg2: memref<16x32xf32, #tpu.memory_space<vmem>>, %arg3: memref<16x2xi32, #tpu.memory_space<vmem>>, %arg4: memref<2x16xi32, #tpu.memory_space<vmem>>, %arg5: memref<16x8xf32, #tpu.memory_space<vmem>>, %arg6: memref<16x2xf32, #tpu.memory_space<vmem>>) attributes {dimension_semantics = [#tpu.dimension_semantics<parallel>], iteration_bounds = array<i64: 1>, scalar_prefetch = 0 : i64, scratch_operands = 0 : i64, tpu.core_type = #tpu.core_type<tc>, window_params = [{transform_indices = @transform_0, window_bounds = array<i64: 16, 32>}, {pipeline_mode = #tpu.pipeline_mode<synchronous>, transform_indices = @transform_1, window_bounds = array<i64: 16, 32>}, {transform_indices = @transform_2, window_bounds = array<i64: 16, 2>}, {pipeline_mode = #tpu.pipeline_mode<synchronous>, transform_indices = @transform_3, window_bounds = array<i64: 2, 16>}, {transform_indices = @transform_4, window_bounds = array<i64: 16, 8>}, {transform_indices = @transform_5, window_bounds = array<i64: 16, 2>}]} {
    %c0 = arith.constant 0 : index
    %c0_0 = arith.constant 0 : index
    %0 = vector.load %arg1[%c0, %c0_0] : memref<16x32xf32, #tpu.memory_space<vmem>>, vector<16x32xf32>
    %c0_1 = arith.constant 0 : index
    %c0_2 = arith.constant 0 : index
    %1 = vector.load %arg2[%c0_1, %c0_2] : memref<16x32xf32, #tpu.memory_space<vmem>>, vector<16x32xf32>
    %cst = arith.constant dense<0.000000e+00> : vector<16x16xf32>
    %2 = tpu.matmul %0, %1, %cst {dimension_numbers = #tpu.dot_dimension_numbers<[1], [1], [0], [0], [0, 0, 1, 0], [], []>} : vector<16x32xf32>, vector<16x32xf32>, vector<16x16xf32> -> vector<16x16xf32>
    %c16_i32 = arith.constant 16 : i32
    %3 = arith.muli %arg0, %c16_i32 : i32
    %4 = tpu.iota {dimensions = array<i32: 0>} : vector<16x1xi32>
    %5 = vector.broadcast %3 : i32 to vector<16x1xi32>
    %6 = arith.addi %5, %4 : vector<16x1xi32>
    %7 = tpu.iota {dimensions = array<i32: 1>} : vector<16x16xi32>
    %8 = vector.broadcast %6 : vector<16x1xi32> to vector<16x16xi32>
    %9 = arith.cmpi ne, %7, %8 : vector<16x16xi32>
    %c16_i32_3 = arith.constant 16 : i32
    %10 = vector.broadcast %c16_i32_3 : i32 to vector<16x1xi32>
    %11 = arith.cmpi slt, %6, %10 : vector<16x1xi32>
    %cst_4 = arith.constant dense<0xFF800000> : vector<16xf32>
    %12 = vector.multi_reduction <maximumf>, %2, %cst_4 [1] : vector<16x16xf32> to vector<16xf32>
    %13 = vector.shape_cast %12 : vector<16xf32> to vector<16x1xf32>
    %14 = vector.broadcast %13 : vector<16x1xf32> to vector<16x16xf32>
    %15 = arith.subf %2, %14 : vector<16x16xf32>
    %c0_5 = arith.constant 0 : index
    %c0_6 = arith.constant 0 : index
    %16 = vector.load %arg5[%c0_5, %c0_6] : memref<16x8xf32, #tpu.memory_space<vmem>>, vector<16x8xf32>
    %cst_7 = arith.constant 14.2857141 : f32
    %17 = vector.broadcast %cst_7 : f32 to vector<16x8xf32>
    %18 = arith.mulf %16, %17 : vector<16x8xf32>
    %19 = tpu.concatenate %18, %18 in 1 : vector<16x8xf32>, vector<16x8xf32> -> vector<16x16xf32>
    %20 = arith.mulf %15, %19 : vector<16x16xf32>
    %21 = math.exp %20 : vector<16x16xf32>
    %cst_8 = arith.constant 0.000000e+00 : f32
    %22 = vector.broadcast %cst_8 : f32 to vector<16x16xf32>
    %23 = arith.select %9, %21, %22 : vector<16x16xi1>, vector<16x16xf32>
    %cst_9 = arith.constant dense<0.000000e+00> : vector<16xf32>
    %24 = vector.multi_reduction <add>, %23, %cst_9 [1] : vector<16x16xf32> to vector<16xf32>
    %25 = vector.shape_cast %24 : vector<16xf32> to vector<16x1xf32>
    %26 = math.log %25 : vector<16x1xf32>
    %c0_10 = arith.constant 0 : index
    %c0_11 = arith.constant 0 : index
    %27 = vector.load %arg3[%c0_10, %c0_11] : memref<16x2xi32, #tpu.memory_space<vmem>>, vector<16x1xi32>
    %c0_12 = arith.constant 0 : index
    %c0_13 = arith.constant 0 : index
    %28 = vector.load %arg4[%c0_12, %c0_13] : memref<2x16xi32, #tpu.memory_space<vmem>>, vector<1x16xi32>
    %29 = vector.broadcast %27 : vector<16x1xi32> to vector<16x16xi32>
    %30 = vector.broadcast %28 : vector<1x16xi32> to vector<16x16xi32>
    %31 = arith.cmpi eq, %29, %30 : vector<16x16xi32>
    %32 = arith.andi %31, %9 : vector<16x16xi1>
    %cst_14 = arith.constant 0.000000e+00 : f32
    %33 = vector.broadcast %cst_14 : f32 to vector<16x16xf32>
    %34 = arith.select %32, %20, %33 : vector<16x16xi1>, vector<16x16xf32>
    %cst_15 = arith.constant dense<0.000000e+00> : vector<16xf32>
    %35 = vector.multi_reduction <add>, %34, %cst_15 [1] : vector<16x16xf32> to vector<16xf32>
    %36 = vector.shape_cast %35 : vector<16xf32> to vector<16x1xf32>
    %cst_16 = arith.constant 1.000000e+00 : f32
    %cst_17 = arith.constant 0.000000e+00 : f32
    %37 = vector.broadcast %cst_16 : f32 to vector<16x16xf32>
    %38 = vector.broadcast %cst_17 : f32 to vector<16x16xf32>
    %39 = arith.select %32, %37, %38 : vector<16x16xi1>, vector<16x16xf32>
    %cst_18 = arith.constant dense<0.000000e+00> : vector<16xf32>
    %40 = vector.multi_reduction <add>, %39, %cst_18 [1] : vector<16x16xf32> to vector<16xf32>
    %41 = vector.shape_cast %40 : vector<16xf32> to vector<16x1xf32>
    %cst_19 = arith.constant 9.99999997E-7 : f32
    %42 = vector.broadcast %cst_19 : f32 to vector<16x1xf32>
    %43 = arith.cmpf olt, %41, %42 : vector<16x1xf32>
    %cst_20 = arith.constant 1.000000e+00 : f32
    %44 = vector.broadcast %cst_20 : f32 to vector<16x1xf32>
    %45 = arith.select %43, %44, %41 : vector<16x1xi1>, vector<16x1xf32>
    %46 = arith.mulf %41, %26 : vector<16x1xf32>
    %47 = arith.subf %36, %46 : vector<16x1xf32>
    %48 = arith.divf %47, %45 : vector<16x1xf32>
    %cst_21 = arith.constant -1.000000e+00 : f32
    %49 = vector.broadcast %cst_21 : f32 to vector<16x1xf32>
    %50 = arith.mulf %49, %48 : vector<16x1xf32>
    %cst_22 = arith.constant 0.000000e+00 : f32
    %51 = vector.broadcast %cst_22 : f32 to vector<16x1xf32>
    %52 = arith.select %11, %50, %51 : vector<16x1xi1>, vector<16x1xf32>
    %c0_23 = arith.constant 0 : index
    %c1 = arith.constant 1 : index
    %53 = vector.load %arg3[%c0_23, %c1] : memref<16x2xi32, #tpu.memory_space<vmem>>, vector<16x1xi32>
    %c1_24 = arith.constant 1 : index
    %c0_25 = arith.constant 0 : index
    %54 = vector.load %arg4[%c1_24, %c0_25] : memref<2x16xi32, #tpu.memory_space<vmem>>, vector<1x16xi32>
    %55 = vector.broadcast %53 : vector<16x1xi32> to vector<16x16xi32>
    %56 = vector.broadcast %54 : vector<1x16xi32> to vector<16x16xi32>
    %57 = arith.cmpi eq, %55, %56 : vector<16x16xi32>
    %58 = arith.andi %57, %9 : vector<16x16xi1>
    %cst_26 = arith.constant 0.000000e+00 : f32
    %59 = vector.broadcast %cst_26 : f32 to vector<16x16xf32>
    %60 = arith.select %58, %20, %59 : vector<16x16xi1>, vector<16x16xf32>
    %cst_27 = arith.constant dense<0.000000e+00> : vector<16xf32>
    %61 = vector.multi_reduction <add>, %60, %cst_27 [1] : vector<16x16xf32> to vector<16xf32>
    %62 = vector.shape_cast %61 : vector<16xf32> to vector<16x1xf32>
    %cst_28 = arith.constant 1.000000e+00 : f32
    %cst_29 = arith.constant 0.000000e+00 : f32
    %63 = vector.broadcast %cst_28 : f32 to vector<16x16xf32>
    %64 = vector.broadcast %cst_29 : f32 to vector<16x16xf32>
    %65 = arith.select %58, %63, %64 : vector<16x16xi1>, vector<16x16xf32>
    %cst_30 = arith.constant dense<0.000000e+00> : vector<16xf32>
    %66 = vector.multi_reduction <add>, %65, %cst_30 [1] : vector<16x16xf32> to vector<16xf32>
    %67 = vector.shape_cast %66 : vector<16xf32> to vector<16x1xf32>
    %cst_31 = arith.constant 9.99999997E-7 : f32
    %68 = vector.broadcast %cst_31 : f32 to vector<16x1xf32>
    %69 = arith.cmpf olt, %67, %68 : vector<16x1xf32>
    %cst_32 = arith.constant 1.000000e+00 : f32
    %70 = vector.broadcast %cst_32 : f32 to vector<16x1xf32>
    %71 = arith.select %69, %70, %67 : vector<16x1xi1>, vector<16x1xf32>
    %72 = arith.mulf %67, %26 : vector<16x1xf32>
    %73 = arith.subf %62, %72 : vector<16x1xf32>
    %74 = arith.divf %73, %71 : vector<16x1xf32>
    %cst_33 = arith.constant -1.000000e+00 : f32
    %75 = vector.broadcast %cst_33 : f32 to vector<16x1xf32>
    %76 = arith.mulf %75, %74 : vector<16x1xf32>
    %cst_34 = arith.constant 0.000000e+00 : f32
    %77 = vector.broadcast %cst_34 : f32 to vector<16x1xf32>
    %78 = arith.select %11, %76, %77 : vector<16x1xi1>, vector<16x1xf32>
    %79 = tpu.concatenate %52, %78 in 1 : vector<16x1xf32>, vector<16x1xf32> -> vector<16x2xf32>
    %c0_35 = arith.constant 0 : index
    %c0_36 = arith.constant 0 : index
    %80 = vector.load %arg6[%c0_35, %c0_36] : memref<16x2xf32, #tpu.memory_space<vmem>>, vector<16x2xf32>
    tpu.vector_store %arg6[%c0_35, %c0_36], %79 {strides = array<i32>} : memref<16x2xf32, #tpu.memory_space<vmem>>, vector<16x2xf32>,
    return
  }
  func.func @transform_0(%arg0: i32) -> (i32, i32) {
    %c0_i32 = arith.constant 0 : i32
    %c0_i32_0 = arith.constant 0 : i32
    return %arg0, %c0_i32 : i32, i32
  }
  func.func @transform_1(%arg0: i32) -> (i32, i32) {
    %c0_i32 = arith.constant 0 : i32
    %c0_i32_0 = arith.constant 0 : i32
    %c0_i32_1 = arith.constant 0 : i32
    return %c0_i32, %c0_i32_0 : i32, i32
  }
  func.func @transform_2(%arg0: i32) -> (i32, i32) {
    %c0_i32 = arith.constant 0 : i32
    %c0_i32_0 = arith.constant 0 : i32
    return %arg0, %c0_i32 : i32, i32
  }
  func.func @transform_3(%arg0: i32) -> (i32, i32) {
    %c0_i32 = arith.constant 0 : i32
    %c0_i32_0 = arith.constant 0 : i32
    %c0_i32_1 = arith.constant 0 : i32
    return %c0_i32, %c0_i32_0 : i32, i32
  }
  func.func @transform_4(%arg0: i32) -> (i32, i32) {
    %c0_i32 = arith.constant 0 : i32
    %c0_i32_0 = arith.constant 0 : i32
    return %arg0, %c0_i32 : i32, i32
  }
  func.func @transform_5(%arg0: i32) -> (i32, i32) {
    %c0_i32 = arith.constant 0 : i32
    %c0_i32_0 = arith.constant 0 : i32
    return %arg0, %c0_i32 : i32, i32
  }
}

module attributes {stable_mosaic.version = 11 : i64} {
  func.func @_supcon_rows_kernel(%arg0: i32, %arg1: memref<16x32xf32, #tpu.memory_space<vmem>>, %arg2: memref<16x32xf32, #tpu.memory_space<vmem>>, %arg3: memref<16x2xi32, #tpu.memory_space<vmem>>, %arg4: memref<2x16xi32, #tpu.memory_space<vmem>>, %arg5: memref<16x8xf32, #tpu.memory_space<vmem>>, %arg6: memref<16x2xf32, #tpu.memory_space<vmem>>) attributes {dimension_semantics = [#tpu.dimension_semantics<parallel>], iteration_bounds = array<i64: 1>, scalar_prefetch = 0 : i64, scratch_operands = 0 : i64, tpu.core_type = #tpu.core_type<tc>, window_params = [{transform_indices = @transform_0, window_bounds = array<i64: 16, 32>}, {pipeline_mode = #tpu.pipeline_mode<synchronous>, transform_indices = @transform_1, window_bounds = array<i64: 16, 32>}, {transform_indices = @transform_2, window_bounds = array<i64: 16, 2>}, {pipeline_mode = #tpu.pipeline_mode<synchronous>, transform_indices = @transform_3, window_bounds = array<i64: 2, 16>}, {transform_indices = @transform_4, window_bounds = array<i64: 16, 8>}, {transform_indices = @transform_5, window_bounds = array<i64: 16, 2>}]} {
    %c0 = arith.constant 0 : index
    %c0_0 = arith.constant 0 : index
    %0 = vector.load %arg1[%c0, %c0_0] : memref<16x32xf32, #tpu.memory_space<vmem>>, vector<16x32xf32>
    %c0_1 = arith.constant 0 : index
    %c0_2 = arith.constant 0 : index
    %1 = vector.load %arg2[%c0_1, %c0_2] : memref<16x32xf32, #tpu.memory_space<vmem>>, vector<16x32xf32>
    %cst = arith.constant dense<0.000000e+00> : vector<16x16xf32>
    %2 = tpu.matmul %0, %1, %cst {dimension_numbers = #tpu.dot_dimension_numbers<[1], [1], [0], [0], [0, 0, 1, 0], [], []>} : vector<16x32xf32>, vector<16x32xf32>, vector<16x16xf32> -> vector<16x16xf32>
    %c16_i32 = arith.constant 16 : i32
    %3 = arith.muli %arg0, %c16_i32 : i32
    %4 = tpu.iota {dimensions = array<i32: 0>} : vector<16x1xi32>
    %5 = vector.broadcast %3 : i32 to vector<16x1xi32>
    %6 = arith.addi %5, %4 : vector<16x1xi32>
    %7 = tpu.iota {dimensions = array<i32: 1>} : vector<16x16xi32>
    %8 = vector.broadcast %6 : vector<16x1xi32> to vector<16x16xi32>
    %9 = arith.cmpi ne, %7, %8 : vector<16x16xi32>
    %c16_i32_3 = arith.constant 16 : i32
    %10 = vector.broadcast %c16_i32_3 : i32 to vector<16x1xi32>
    %11 = arith.cmpi slt, %6, %10 : vector<16x1xi32>
    %cst_4 = arith.constant dense<0xFF800000> : vector<16xf32>
    %12 = vector.multi_reduction <maximumf>, %2, %cst_4 [1] : vector<16x16xf32> to vector<16xf32>
    %13 = vector.shape_cast %12 : vector<16xf32> to vector<16x1xf32>
    %14 = vector.broadcast %13 : vector<16x1xf32> to vector<16x16xf32>
    %15 = arith.subf %2, %14 : vector<16x16xf32>
    %c0_5 = arith.constant 0 : index
    %c0_6 = arith.constant 0 : index
    %16 = vector.load %arg5[%c0_5, %c0_6] : memref<16x8xf32, #tpu.memory_space<vmem>>, vector<16x8xf32>
    %cst_7 = arith.constant 14.2857141 : f32
    %17 = vector.broadcast %cst_7 : f32 to vector<16x8xf32>
    %18 = arith.mulf %16, %17 : vector<16x8xf32>
    %19 = tpu.concatenate %18, %18 in 1 : vector<16x8xf32>, vector<16x8xf32> -> vector<16x16xf32>
    %20 = arith.mulf %15, %19 : vector<16x16xf32>
    %21 = math.exp %20 : vector<16x16xf32>
    %cst_8 = arith.constant 0.000000e+00 : f32
    %22 = vector.broadcast %cst_8 : f32 to vector<16x16xf32>
    %23 = arith.select %9, %21, %22 : vector<16x16xi1>, vector<16x16xf32>
    %cst_9 = arith.constant dense<0.000000e+00> : vector<16xf32>
    %24 = vector.multi_reduction <add>, %23, %cst_9 [1] : vector<16x16xf32> to vector<16xf32>
    %25 = vector.shape_cast %24 : vector<16xf32> to vector<16x1xf32>
    %26 = math.log %25 : vector<16x1xf32>
    %c0_10 = arith.constant 0 : index
    %c0_11 = arith.constant 0 : index
    %27 = vector.load %arg3[%c0_10, %c0_11] : memref<16x2xi32, #tpu.memory_space<vmem>>, vector<16x1xi32>
    %c0_12 = arith.constant 0 : index
    %c0_13 = arith.constant 0 : index
    %28 = vector.load %arg4[%c0_12, %c0_13] : memref<2x16xi32, #tpu.memory_space<vmem>>, vector<1x16xi32>
    %29 = vector.broadcast %27 : vector<16x1xi32> to vector<16x16xi32>
    %30 = vector.broadcast %28 : vector<1x16xi32> to vector<16x16xi32>
    %31 = arith.cmpi eq, %29, %30 : vector<16x16xi32>
    %32 = arith.andi %31, %9 : vector<16x16xi1>
    %cst_14 = arith.constant 0.000000e+00 : f32
    %33 = vector.broadcast %cst_14 : f32 to vector<16x16xf32>
    %34 = arith.select %32, %20, %33 : vector<16x16xi1>, vector<16x16xf32>
    %cst_15 = arith.constant dense<0.000000e+00> : vector<16xf32>
    %35 = vector.multi_reduction <add>, %34, %cst_15 [1] : vector<16x16xf32> to vector<16xf32>
    %36 = vector.shape_cast %35 : vector<16xf32> to vector<16x1xf32>
    %cst_16 = arith.constant 1.000000e+00 : f32
    %cst_17 = arith.constant 0.000000e+00 : f32
    %37 = vector.broadcast %cst_16 : f32 to vector<16x16xf32>
    %38 = vector.broadcast %cst_17 : f32 to vector<16x16xf32>
    %39 = arith.select %32, %37, %38 : vector<16x16xi1>, vector<16x16xf32>
    %cst_18 = arith.constant dense<0.000000e+00> : vector<16xf32>
    %40 = vector.multi_reduction <add>, %39, %cst_18 [1] : vector<16x16xf32> to vector<16xf32>
    %41 = vector.shape_cast %40 : vector<16xf32> to vector<16x1xf32>
    %cst_19 = arith.constant 9.99999997E-7 : f32
    %42 = vector.broadcast %cst_19 : f32 to vector<16x1xf32>
    %43 = arith.cmpf olt, %41, %42 : vector<16x1xf32>
    %cst_20 = arith.constant 1.000000e+00 : f32
    %44 = vector.broadcast %cst_20 : f32 to vector<16x1xf32>
    %45 = arith.select %43, %44, %41 : vector<16x1xi1>, vector<16x1xf32>
    %46 = arith.mulf %41, %26 : vector<16x1xf32>
    %47 = arith.subf %36, %46 : vector<16x1xf32>
    %48 = arith.divf %47, %45 : vector<16x1xf32>
    %cst_21 = arith.constant -1.000000e+00 : f32
    %49 = vector.broadcast %cst_21 : f32 to vector<16x1xf32>
    %50 = arith.mulf %49, %48 : vector<16x1xf32>
    %cst_22 = arith.constant 0.000000e+00 : f32
    %51 = vector.broadcast %cst_22 : f32 to vector<16x1xf32>
    %52 = arith.select %11, %50, %51 : vector<16x1xi1>, vector<16x1xf32>
    %c0_23 = arith.constant 0 : index
    %c1 = arith.constant 1 : index
    %53 = vector.load %arg3[%c0_23, %c1] : memref<16x2xi32, #tpu.memory_space<vmem>>, vector<16x1xi32>
    %c1_24 = arith.constant 1 : index
    %c0_25 = arith.constant 0 : index
    %54 = vector.load %arg4[%c1_24, %c0_25] : memref<2x16xi32, #tpu.memory_space<vmem>>, vector<1x16xi32>
    %55 = vector.broadcast %53 : vector<16x1xi32> to vector<16x16xi32>
    %56 = vector.broadcast %54 : vector<1x16xi32> to vector<16x16xi32>
    %57 = arith.cmpi eq, %55, %56 : vector<16x16xi32>
    %58 = arith.andi %57, %9 : vector<16x16xi1>
    %cst_26 = arith.constant 0.000000e+00 : f32
    %59 = vector.broadcast %cst_26 : f32 to vector<16x16xf32>
    %60 = arith.select %58, %20, %59 : vector<16x16xi1>, vector<16x16xf32>
    %cst_27 = arith.constant dense<0.000000e+00> : vector<16xf32>
    %61 = vector.multi_reduction <add>, %60, %cst_27 [1] : vector<16x16xf32> to vector<16xf32>
    %62 = vector.shape_cast %61 : vector<16xf32> to vector<16x1xf32>
    %cst_28 = arith.constant 1.000000e+00 : f32
    %cst_29 = arith.constant 0.000000e+00 : f32
    %63 = vector.broadcast %cst_28 : f32 to vector<16x16xf32>
    %64 = vector.broadcast %cst_29 : f32 to vector<16x16xf32>
    %65 = arith.select %58, %63, %64 : vector<16x16xi1>, vector<16x16xf32>
    %cst_30 = arith.constant dense<0.000000e+00> : vector<16xf32>
    %66 = vector.multi_reduction <add>, %65, %cst_30 [1] : vector<16x16xf32> to vector<16xf32>
    %67 = vector.shape_cast %66 : vector<16xf32> to vector<16x1xf32>
    %cst_31 = arith.constant 9.99999997E-7 : f32
    %68 = vector.broadcast %cst_31 : f32 to vector<16x1xf32>
    %69 = arith.cmpf olt, %67, %68 : vector<16x1xf32>
    %cst_32 = arith.constant 1.000000e+00 : f32
    %70 = vector.broadcast %cst_32 : f32 to vector<16x1xf32>
    %71 = arith.select %69, %70, %67 : vector<16x1xi1>, vector<16x1xf32>
    %72 = arith.mulf %67, %26 : vector<16x1xf32>
    %73 = arith.subf %62, %72 : vector<16x1xf32>
    %74 = arith.divf %73, %71 : vector<16x1xf32>
    %cst_33 = arith.constant -1.000000e+00 : f32
    %75 = vector.broadcast %cst_33 : f32 to vector<16x1xf32>
    %76 = arith.mulf %75, %74 : vector<16x1xf32>
    %cst_34 = arith.constant 0.000000e+00 : f32
    %77 = vector.broadcast %cst_34 : f32 to vector<16x1xf32>
    %78 = arith.select %11, %76, %77 : vector<16x1xi1>, vector<16x1xf32>
    %79 = tpu.concatenate %52, %78 in 1 : vector<16x1xf32>, vector<16x1xf32> -> vector<16x2xf32>
    %c0_35 = arith.constant 0 : index
    %c0_36 = arith.constant 0 : index
    %80 = vector.load %arg6[%c0_35, %c0_36] : memref<16x2xf32, #tpu.memory_space<vmem>>, vector<16x2xf32>
    tpu.vector_store %arg6[%c0_35, %c0_36], %79 {strides = array<i32>} : memref<16x2xf32, #tpu.memory_space<vmem>>, vector<16x2xf32>,
    return
  }
  func.func @transform_0(%arg0: i32) -> (i32, i32) {
    %c0_i32 = arith.constant 0 : i32
    %c0_i32_0 = arith.constant 0 : i32
    return %arg0, %c0_i32 : i32, i32
  }
  func.func @transform_1(%arg0: i32) -> (i32, i32) {
    %c0_i32 = arith.constant 0 : i32
    %c0_i32_0 = arith.constant 0 : i32
    %c0_i32_1 = arith.constant 0 : i32
    return %c0_i32, %c0_i32_0 : i32, i32
  }
  func.func @transform_2(%arg0: i32) -> (i32, i32) {
    %c0_i32 = arith.constant 0 : i32
    %c0_i32_0 = arith.constant 0 : i32
    return %arg0, %c0_i32 : i32, i32
  }
  func.func @transform_3(%arg0: i32) -> (i32, i32) {
    %c0_i32 = arith.constant 0 : i32
    %c0_i32_0 = arith.constant 0 : i32
    %c0_i32_1 = arith.constant 0 : i32
    return %c0_i32, %c0_i32_0 : i32, i32
  }
  func.func @transform_4(%arg0: i32) -> (i32, i32) {
    %c0_i32 = arith.constant 0 : i32
    %c0_i32_0 = arith.constant 0 : i32
    return %arg0, %c0_i32 : i32, i32
  }
  func.func @transform_5(%arg0: i32) -> (i32, i32) {
    %c0_i32 = arith.constant 0 : i32
    %c0_i32_0 = arith.constant 0 : i32
    return %arg0, %c0_i32 : i32, i32
  }
}

</mosaic_0001>

<bundles_post_ra>
// kernel: tpu_custom_call.1
= control target key start
LH: loop header
LB: loop body
LE: loop exit
PB: predicated region body
PF: predicated region fallthrough
CT: control target
= control target key end

     0   :  { %vm24_vm0 = vcmask 261120   ;;  %s320_s29 = smov 8   ;;  %v321_v9 = vmov 0   ;;  %v322_v12 = vmov 1   ;;  %vm125_vm2 = vcmask 130048   ;;  %s440_s1 = inlined_call_operand.vmem [shape: f32[16,32], index: 1, kind: input, shape index: {}]   ;;  %s441_s0 = inlined_call_operand.vmem [shape: f32[16,32], index: 0, kind: input, shape index: {}]   ;;  %s442_s4 = inlined_call_operand.vmem [shape: f32[16,8], index: 4, kind: input, shape index: {}]   ;;  %s443_s2 = inlined_call_operand.vmem [shape: s32[16,2], index: 2, kind: input, shape index: {}]   ;;  %s444_s3 = inlined_call_operand.vmem [shape: s32[2,16], index: 3, kind: input, shape index: {}]   ;;  %s445_s5 = inlined_call_operand.vmem [shape: f32[16,2], index: 5, kind: output, shape index: {}]  }
   0x1   :  { %v22_v0 = vld [vmem:[%s440_s1] sm:$0xff]  ;;  %v23_v1 = vld [vmem:[%s440_s1 + $0x8] sm:$0xff]  ;;  %vm291_vm1 = vmpackc.low %vm24_vm0, %vm24_vm0  ;;  %301 = vset.pattern.permute.xlu1 %v321_v9  ;;  %300 = vset.pattern.permute.xlu0 %v321_v9  ;;  %v113_v19 = vlaneseq  ;;  %vm146_vm3 = vcmask 64512   ;;  %v323_v41 = vmov 0.0  }
   0x2   :  { %v290_v2 = vpack.c.bf16 %v23_v1, %v22_v0  ;;  %v20_v3 = vld [vmem:[%s441_s0] sm:$0xff]  ;;  %v21_v4 = vld [vmem:[%s441_s0 + $0x8] sm:$0xff] }
   0x3   :  { %287 = vmatprep.mubr.msk.f32.mxu0 %vm24_vm0, %v20_v3  ;;  %v134_v5 = vld [vmem:[%s442_s4] sm:$0xff]  ;;  %v135_v7 = vld [vmem:[%s442_s4 + $0x8] sm:$0xff]  ;;  %v114_v24 = vshrl.u32 %v113_v19, 7  ;;  %v120_v32 = vand.u32 127, %v113_v19 }
   0x4   :  { %292 = vmatprep.subr.msk.bf16.mxu0 %vm291_vm1, %v290_v2  ;;  %v136_v6 = vmul.f32 14.285714, %v134_v5  ;;  %v137_v8 = vmul.f32 14.285714, %v135_v7  ;;  %v168_v10 = vld [vmem:[%s443_s2 + $0x8] sm:$0xff]  ;;  %v167_v11 = vld [vmem:[%s443_s2] sm:$0xff] }
   0x5   :  { %295 = vmatpush3.bf16.xpose.msk.msra.mxu0 %vm291_vm1, %v290_v2  ;;  %v115_v31 = vadd.s32 8, %v114_v24  ;;  %v277_v33 = vld [vmem:[%s444_s3] ss:$0 sm:$0xff]  ;;  %v278_v36 = vld [vmem:[%s444_s3 + $0x1] ss:$0 sm:$0xff]  ;;  %vm121_vm7 = vcmp.ne.s32.totalorder %v120_v32, %v114_v24 }
   0x6   :  { %140 = vrot.lane.b32.xlu1 %v136_v6, %s320_s29 }
   0x7   :  { %vm122_vm4 = vcmp.ne.s32.totalorder %v120_v32, %v115_v31 }
   0xa   :  { %142 = vrot.lane.b32.xlu1 %v137_v8, %s320_s29 }
   0xc   :  { %288 = vmatmul.mubr.msk.f32.vlgmr.msra.gmra.mrb[0].mxu0 %vm24_vm0, %v21_v4 }
   0xe   :  { %174 = vperm.xlu1 %301, %v168_v10  }
  0x12   :  { %302 = vset.pattern.permute.xlu1 %v322_v12 }
  0x13   :  { %218 = vperm.xlu1 %302, %v167_v11  }
  0x17   :  { %221 = vperm.xlu1 %302, %v168_v10  }
  0x78   :  { %v141_v17 = vpop.permute.xlu1 %140 }
  0x79   :  { %v147_v30 = vsel %vm146_vm3, %v136_v6, %v141_v17 }
  0x7c   :  { %v143_v18 = vpop.permute.xlu1 %142 }
  0x7d   :  { %v148_v23 = vsel %vm146_vm3, %v137_v8, %v143_v18  ;;  %vm266_vm3 = vcmask 15360  }
  0x8d   :  { %v175_v20 = vpop.permute.xlu1 %174 }
  0x8e   :  { %vm181_vm5 = vcmp.eq.s32.totalorder %v175_v20, %v277_v33 }
  0x8f   :  { %vm387_vm6 = vmand %vm181_vm5, %vm122_vm4 }
  0x90   :  { %v193_v43 = vsel %vm387_vm6, 1.0, %v323_v41 }
  0x91   :  { %v197_v49 = vsel %vm125_vm2, %v193_v43, 0.0 }
  0x92   :  { %v219_v27 = vpop.permute.xlu1 %218 }
  0x93   :  { %vm227_vm11 = vcmp.eq.s32.totalorder %v219_v27, %v278_v36 }
  0x94   :  { %vm407_vm13 = vmand %vm227_vm11, %vm121_vm7 }
  0x95   :  { %v239_v51 = vsel %vm407_vm13, 1.0, %v323_v41 }
  0x96   :  { %v222_v37 = vpop.permute.xlu1 %221  ;;  %v241_v54 = vsel %vm125_vm2, %v239_v51, 0.0 }
  0x97   :  { %vm228_vm9 = vcmp.eq.s32.totalorder %v222_v37, %v278_v36 }
  0x98   :  { %vm402_vm12 = vmand %vm228_vm9, %vm122_vm4 }
  0x99   :  { %v240_v58 = vsel %vm402_vm12, 1.0, %v323_v41 }
  0x9a   :  { %v244_v59 = vsel %vm125_vm2, %v240_v58, 0.0 }
  0xdf   :  { %v289_v13 = vpop.f32.mrb[0].mxu0 }
  0xe0   :  { %v103_v14 = vpop.f32.mrb[1].mxu0  ;;  %v129_v15 = vsel %vm125_vm2, %v289_v13, -inf }
  0xe1   :  { %130 = vmax.xlane.f32.xlu0 %v129_v15  ;;  %v126_v16 = vsel %vm125_vm2, %v103_v14, -inf }
  0xe5   :  { %127 = vmax.xlane.f32.xlu0 %v126_v16 }
  0xfb   :  { %171 = vperm.xlu0 %300, %v167_v11  }
  0xff   :  { %303 = vset.pattern.permute.xlu0 %v322_v12 }
 0x16e   :  { %v131_v21 = vpop.xlane.xlu0 %130 }
 0x16f   :  { %v133_v22 = vsub.f32 %v289_v13, %v131_v21 }
 0x171   :  { %v150_v25 = vmul.f32 %v148_v23, %v133_v22 }
 0x172   :  { %v128_v26 = vpop.xlane.xlu0 %127 }
 0x173   :  { %v153_v28 = vmul.f32 1.442695, %v150_v25  ;;  %v132_v29 = vsub.f32 %v103_v14, %v128_v26  ;;  %v232_v52 = vsel %vm402_vm12, %v150_v25, 0.0  ;;  %v185_v62 = vsel %vm387_vm6, %v150_v25, 0.0 }
 0x174   :  { %v236_v55 = vsel %vm125_vm2, %v232_v52, 0.0  ;;  %v189_v63 = vsel %vm125_vm2, %v185_v62, 0.0 }
 0x175   :  { %304 = vpow2.f32 %v153_v28  ;;  %v149_v34 = vmul.f32 %v147_v30, %v132_v29 }
 0x177   :  { %v151_v35 = vmul.f32 1.442695, %v149_v34  ;;  %v231_v0 = vsel %vm407_vm13, %v149_v34, 0.0 }
 0x178   :  { %v233_v1 = vsel %vm125_vm2, %v231_v0, 0.0 }
 0x179   :  { %306 = vpow2.f32 %v151_v35 }
 0x17a   :  { %v172_v38 = vpop.permute.xlu0 %171 }
 0x17b   :  { %vm180_vm8 = vcmp.eq.s32.totalorder %v172_v38, %v277_v33 }
 0x17c   :  { %vm392_vm10 = vmand %vm180_vm8, %vm121_vm7 }
 0x17d   :  { %v192_v42 = vsel %vm392_vm10, 1.0, %v323_v41  ;;  %v184_v60 = vsel %vm392_vm10, %v149_v34, 0.0 }
 0x17e   :  { %v194_v44 = vsel %vm125_vm2, %v192_v42, 0.0  ;;  %v186_v61 = vsel %vm125_vm2, %v184_v60, 0.0 }
 0x17f   :  { %v305_v45 = vpop.eup %304  ;;  %195 = vadd.xlane.f32.xlu1 %v194_v44 }
 0x180   :  { %v156_v48 = vsel %vm122_vm4, %v305_v45, 0.0 }
 0x181   :  { %v160_v50 = vsel %vm125_vm2, %v156_v48, 0.0 }
 0x182   :  { %161 = vadd.xlane.f32.xlu0 %v160_v50 }
 0x183   :  { %198 = vadd.xlane.f32.xlu1 %v197_v49  ;;  %v307_v53 = vpop.eup %306 }
 0x184   :  { %v155_v56 = vsel %vm121_vm7, %v307_v53, 0.0 }
 0x185   :  { %v157_v57 = vsel %vm125_vm2, %v155_v56, 0.0  ;;  %vm263_vm2 = vcmask 7168  }
 0x186   :  { %237 = vadd.xlane.f32.xlu0 %v236_v55 }
 0x187   :  { %242 = vadd.xlane.f32.xlu1 %v241_v54 }
 0x18b   :  { %158 = vadd.xlane.f32.xlu1 %v157_v57 }
 0x18f   :  { %245 = vadd.xlane.f32.xlu1 %v244_v59 }
 0x193   :  { %187 = vadd.xlane.f32.xlu1 %v186_v61 }
 0x197   :  { %190 = vadd.xlane.f32.xlu1 %v189_v63 }
 0x19b   :  { %234 = vadd.xlane.f32.xlu1 %v233_v1 }
 0x20c   :  { %v196_v2 = vpop.xlane.xlu1 %195 }
 0x20d   :  { %vm200_vm15 = vcmp.lt.f32.partialorder %v196_v2, 1e-06 }
 0x20e   :  { %v202_v8 = vsel %vm200_vm15, 1.0, %v196_v2 }
 0x20f   :  { %v162_v3 = vpop.xlane.xlu0 %161 }
 0x210   :  { %v199_v4 = vpop.xlane.xlu1 %198  ;;  %308 = vlog2.f32 %v162_v3 }
 0x211   :  { %vm201_vm14 = vcmp.lt.f32.partialorder %v199_v4, 1e-06 }
 0x212   :  { %v203_v7 = vsel %vm201_vm14, 1.0, %v199_v4 }
 0x213   :  { %v238_v24 = vpop.xlane.xlu0 %237 }
 0x214   :  { %v243_v5 = vpop.xlane.xlu1 %242 }
 0x215   :  { %vm247_vm0 = vcmp.lt.f32.partialorder %v243_v5, 1e-06 }
 0x216   :  { %v249_v11 = vsel %vm247_vm0, 1.0, %v243_v5 }
 0x218   :  { %v159_v6 = vpop.xlane.xlu1 %158 }
 0x219   :  { %310 = vlog2.f32 %v159_v6 }
 0x21a   :  { %v309_v9 = vpop.eup %308  ;;  %312 = vrcp.f32 %v203_v7 }
 0x21b   :  { %314 = vrcp.f32 %v202_v8  ;;  %v166_v13 = vmul.f32 0.6931472, %v309_v9 }
 0x21c   :  { %v246_v10 = vpop.xlane.xlu1 %245 }
 0x21d   :  { %vm248_vm1 = vcmp.lt.f32.partialorder %v246_v10, 1e-06  ;;  %v205_v16 = vmul.f32 %v199_v4, %v166_v13  ;;  %v252_v18 = vmul.f32 %v246_v10, %v166_v13 }
 0x21e   :  { %v250_v12 = vsel %vm248_vm1, 1.0, %v246_v10 }
 0x21f   :  { %316 = vrcp.f32 %v250_v12  ;;  %v254_v26 = vsub.f32 %v238_v24, %v252_v18 }
 0x220   :  { %318 = vrcp.f32 %v249_v11  ;;  %v188_v14 = vpop.xlane.xlu1 %187 }
 0x223   :  { %v311_v15 = vpop.eup %310 }
 0x224   :  { %v164_v17 = vmul.f32 0.6931472, %v311_v15  ;;  %v191_v19 = vpop.xlane.xlu1 %190  ;;  %v313_v23 = vpop.eup %312 }
 0x225   :  { %v207_v20 = vsub.f32 %v191_v19, %v205_v16  ;;  %v315_v25 = vpop.eup %314 }
 0x226   :  { %v204_v21 = vmul.f32 %v196_v2, %v164_v17  ;;  %v251_v22 = vmul.f32 %v243_v5, %v164_v17 }
 0x227   :  { %v211_v28 = vmul.f32 %v313_v23, %v207_v20 }
 0x228   :  { %v206_v27 = vsub.f32 %v188_v14, %v204_v21  ;;  %v235_v29 = vpop.xlane.xlu1 %234 }
 0x229   :  { %v317_v30 = vpop.eup %316  ;;  %v253_v31 = vsub.f32 %v235_v29, %v251_v22  ;;  %v213_v38 = vmul.f32 -1.0, %v211_v28 }
 0x22a   :  { %v319_v32 = vpop.eup %318  ;;  %v258_v33 = vmul.f32 %v317_v30, %v254_v26  ;;  %v209_v34 = vmul.f32 %v315_v25, %v206_v27 }
 0x22b   :  { %v256_v35 = vmul.f32 %v319_v32, %v253_v31 }
 0x22c   :  { %v260_v36 = vmul.f32 -1.0, %v258_v33  ;;  %v212_v37 = vmul.f32 -1.0, %v209_v34 }
 0x22d   :  { %v259_v39 = vmul.f32 -1.0, %v256_v35 }
 0x22e   :  { %v265_v40 = vsel %vm263_vm2, %v213_v38, %v260_v36 }
 0x22f   :  { %268 = vst.msk [vmem:[%s445_s5 + $0x8] sm:$0xff] %vm266_vm3, %v265_v40  ;;  %v264_v41 = vsel %vm263_vm2, %v212_v37, %v259_v39 }
 0x230   :  { %267 = vst.msk [vmem:[%s445_s5] sm:$0xff] %vm266_vm3, %v264_v41 }

// kernel: tpu_custom_call.1
= control target key start
LH: loop header
LB: loop body
LE: loop exit
PB: predicated region body
PF: predicated region fallthrough
CT: control target
= control target key end

     0   :  { %vm24_vm0 = vcmask 261120   ;;  %s320_s29 = smov 8   ;;  %v321_v9 = vmov 0   ;;  %v322_v12 = vmov 1   ;;  %vm125_vm2 = vcmask 130048   ;;  %s440_s1 = inlined_call_operand.vmem [shape: f32[16,32], index: 1, kind: input, shape index: {}]   ;;  %s441_s0 = inlined_call_operand.vmem [shape: f32[16,32], index: 0, kind: input, shape index: {}]   ;;  %s442_s4 = inlined_call_operand.vmem [shape: f32[16,8], index: 4, kind: input, shape index: {}]   ;;  %s443_s2 = inlined_call_operand.vmem [shape: s32[16,2], index: 2, kind: input, shape index: {}]   ;;  %s444_s3 = inlined_call_operand.vmem [shape: s32[2,16], index: 3, kind: input, shape index: {}]   ;;  %s445_s5 = inlined_call_operand.vmem [shape: f32[16,2], index: 5, kind: output, shape index: {}]  }
   0x1   :  { %v22_v0 = vld [vmem:[%s440_s1] sm:$0xff]  ;;  %v23_v1 = vld [vmem:[%s440_s1 + $0x8] sm:$0xff]  ;;  %vm291_vm1 = vmpackc.low %vm24_vm0, %vm24_vm0  ;;  %301 = vset.pattern.permute.xlu1 %v321_v9  ;;  %300 = vset.pattern.permute.xlu0 %v321_v9  ;;  %v113_v19 = vlaneseq  ;;  %vm146_vm3 = vcmask 64512   ;;  %v323_v41 = vmov 0.0  }
   0x2   :  { %v290_v2 = vpack.c.bf16 %v23_v1, %v22_v0  ;;  %v20_v3 = vld [vmem:[%s441_s0] sm:$0xff]  ;;  %v21_v4 = vld [vmem:[%s441_s0 + $0x8] sm:$0xff] }
   0x3   :  { %287 = vmatprep.mubr.msk.f32.mxu0 %vm24_vm0, %v20_v3  ;;  %v134_v5 = vld [vmem:[%s442_s4] sm:$0xff]  ;;  %v135_v7 = vld [vmem:[%s442_s4 + $0x8] sm:$0xff]  ;;  %v114_v24 = vshrl.u32 %v113_v19, 7  ;;  %v120_v32 = vand.u32 127, %v113_v19 }
   0x4   :  { %292 = vmatprep.subr.msk.bf16.mxu0 %vm291_vm1, %v290_v2  ;;  %v136_v6 = vmul.f32 14.285714, %v134_v5  ;;  %v137_v8 = vmul.f32 14.285714, %v135_v7  ;;  %v168_v10 = vld [vmem:[%s443_s2 + $0x8] sm:$0xff]  ;;  %v167_v11 = vld [vmem:[%s443_s2] sm:$0xff] }
   0x5   :  { %295 = vmatpush3.bf16.xpose.msk.msra.mxu0 %vm291_vm1, %v290_v2  ;;  %v115_v31 = vadd.s32 8, %v114_v24  ;;  %v277_v33 = vld [vmem:[%s444_s3] ss:$0 sm:$0xff]  ;;  %v278_v36 = vld [vmem:[%s444_s3 + $0x1] ss:$0 sm:$0xff]  ;;  %vm121_vm7 = vcmp.ne.s32.totalorder %v120_v32, %v114_v24 }
   0x6   :  { %140 = vrot.lane.b32.xlu1 %v136_v6, %s320_s29 }
   0x7   :  { %vm122_vm4 = vcmp.ne.s32.totalorder %v120_v32, %v115_v31 }
   0xa   :  { %142 = vrot.lane.b32.xlu1 %v137_v8, %s320_s29 }
   0xc   :  { %288 = vmatmul.mubr.msk.f32.vlgmr.msra.gmra.mrb[0].mxu0 %vm24_vm0, %v21_v4 }
   0xe   :  { %174 = vperm.xlu1 %301, %v168_v10  }
  0x12   :  { %302 = vset.pattern.permute.xlu1 %v322_v12 }
  0x13   :  { %218 = vperm.xlu1 %302, %v167_v11  }
  0x17   :  { %221 = vperm.xlu1 %302, %v168_v10  }
  0x78   :  { %v141_v17 = vpop.permute.xlu1 %140 }
  0x79   :  { %v147_v30 = vsel %vm146_vm3, %v136_v6, %v141_v17 }
  0x7c   :  { %v143_v18 = vpop.permute.xlu1 %142 }
  0x7d   :  { %v148_v23 = vsel %vm146_vm3, %v137_v8, %v143_v18  ;;  %vm266_vm3 = vcmask 15360  }
  0x8d   :  { %v175_v20 = vpop.permute.xlu1 %174 }
  0x8e   :  { %vm181_vm5 = vcmp.eq.s32.totalorder %v175_v20, %v277_v33 }
  0x8f   :  { %vm387_vm6 = vmand %vm181_vm5, %vm122_vm4 }
  0x90   :  { %v193_v43 = vsel %vm387_vm6, 1.0, %v323_v41 }
  0x91   :  { %v197_v49 = vsel %vm125_vm2, %v193_v43, 0.0 }
  0x92   :  { %v219_v27 = vpop.permute.xlu1 %218 }
  0x93   :  { %vm227_vm11 = vcmp.eq.s32.totalorder %v219_v27, %v278_v36 }
  0x94   :  { %vm407_vm13 = vmand %vm227_vm11, %vm121_vm7 }
  0x95   :  { %v239_v51 = vsel %vm407_vm13, 1.0, %v323_v41 }
  0x96   :  { %v222_v37 = vpop.permute.xlu1 %221  ;;  %v241_v54 = vsel %vm125_vm2, %v239_v51, 0.0 }
  0x97   :  { %vm228_vm9 = vcmp.eq.s32.totalorder %v222_v37, %v278_v36 }
  0x98   :  { %vm402_vm12 = vmand %vm228_vm9, %vm122_vm4 }
  0x99   :  { %v240_v58 = vsel %vm402_vm12, 1.0, %v323_v41 }
  0x9a   :  { %v244_v59 = vsel %vm125_vm2, %v240_v58, 0.0 }
  0xdf   :  { %v289_v13 = vpop.f32.mrb[0].mxu0 }
  0xe0   :  { %v103_v14 = vpop.f32.mrb[1].mxu0  ;;  %v129_v15 = vsel %vm125_vm2, %v289_v13, -inf }
  0xe1   :  { %130 = vmax.xlane.f32.xlu0 %v129_v15  ;;  %v126_v16 = vsel %vm125_vm2, %v103_v14, -inf }
  0xe5   :  { %127 = vmax.xlane.f32.xlu0 %v126_v16 }
  0xfb   :  { %171 = vperm.xlu0 %300, %v167_v11  }
  0xff   :  { %303 = vset.pattern.permute.xlu0 %v322_v12 }
 0x16e   :  { %v131_v21 = vpop.xlane.xlu0 %130 }
 0x16f   :  { %v133_v22 = vsub.f32 %v289_v13, %v131_v21 }
 0x171   :  { %v150_v25 = vmul.f32 %v148_v23, %v133_v22 }
 0x172   :  { %v128_v26 = vpop.xlane.xlu0 %127 }
 0x173   :  { %v153_v28 = vmul.f32 1.442695, %v150_v25  ;;  %v132_v29 = vsub.f32 %v103_v14, %v128_v26  ;;  %v232_v52 = vsel %vm402_vm12, %v150_v25, 0.0  ;;  %v185_v62 = vsel %vm387_vm6, %v150_v25, 0.0 }
 0x174   :  { %v236_v55 = vsel %vm125_vm2, %v232_v52, 0.0  ;;  %v189_v63 = vsel %vm125_vm2, %v185_v62, 0.0 }
 0x175   :  { %304 = vpow2.f32 %v153_v28  ;;  %v149_v34 = vmul.f32 %v147_v30, %v132_v29 }
 0x177   :  { %v151_v35 = vmul.f32 1.442695, %v149_v34  ;;  %v231_v0 = vsel %vm407_vm13, %v149_v34, 0.0 }
 0x178   :  { %v233_v1 = vsel %vm125_vm2, %v231_v0, 0.0 }
 0x179   :  { %306 = vpow2.f32 %v151_v35 }
 0x17a   :  { %v172_v38 = vpop.permute.xlu0 %171 }
 0x17b   :  { %vm180_vm8 = vcmp.eq.s32.totalorder %v172_v38, %v277_v33 }
 0x17c   :  { %vm392_vm10 = vmand %vm180_vm8, %vm121_vm7 }
 0x17d   :  { %v192_v42 = vsel %vm392_vm10, 1.0, %v323_v41  ;;  %v184_v60 = vsel %vm392_vm10, %v149_v34, 0.0 }
 0x17e   :  { %v194_v44 = vsel %vm125_vm2, %v192_v42, 0.0  ;;  %v186_v61 = vsel %vm125_vm2, %v184_v60, 0.0 }
 0x17f   :  { %v305_v45 = vpop.eup %304  ;;  %195 = vadd.xlane.f32.xlu1 %v194_v44 }
 0x180   :  { %v156_v48 = vsel %vm122_vm4, %v305_v45, 0.0 }
 0x181   :  { %v160_v50 = vsel %vm125_vm2, %v156_v48, 0.0 }
 0x182   :  { %161 = vadd.xlane.f32.xlu0 %v160_v50 }
 0x183   :  { %198 = vadd.xlane.f32.xlu1 %v197_v49  ;;  %v307_v53 = vpop.eup %306 }
 0x184   :  { %v155_v56 = vsel %vm121_vm7, %v307_v53, 0.0 }
 0x185   :  { %v157_v57 = vsel %vm125_vm2, %v155_v56, 0.0  ;;  %vm263_vm2 = vcmask 7168  }
 0x186   :  { %237 = vadd.xlane.f32.xlu0 %v236_v55 }
 0x187   :  { %242 = vadd.xlane.f32.xlu1 %v241_v54 }
 0x18b   :  { %158 = vadd.xlane.f32.xlu1 %v157_v57 }
 0x18f   :  { %245 = vadd.xlane.f32.xlu1 %v244_v59 }
 0x193   :  { %187 = vadd.xlane.f32.xlu1 %v186_v61 }
 0x197   :  { %190 = vadd.xlane.f32.xlu1 %v189_v63 }
 0x19b   :  { %234 = vadd.xlane.f32.xlu1 %v233_v1 }
 0x20c   :  { %v196_v2 = vpop.xlane.xlu1 %195 }
 0x20d   :  { %vm200_vm15 = vcmp.lt.f32.partialorder %v196_v2, 1e-06 }
 0x20e   :  { %v202_v8 = vsel %vm200_vm15, 1.0, %v196_v2 }
 0x20f   :  { %v162_v3 = vpop.xlane.xlu0 %161 }
 0x210   :  { %v199_v4 = vpop.xlane.xlu1 %198  ;;  %308 = vlog2.f32 %v162_v3 }
 0x211   :  { %vm201_vm14 = vcmp.lt.f32.partialorder %v199_v4, 1e-06 }
 0x212   :  { %v203_v7 = vsel %vm201_vm14, 1.0, %v199_v4 }
 0x213   :  { %v238_v24 = vpop.xlane.xlu0 %237 }
 0x214   :  { %v243_v5 = vpop.xlane.xlu1 %242 }
 0x215   :  { %vm247_vm0 = vcmp.lt.f32.partialorder %v243_v5, 1e-06 }
 0x216   :  { %v249_v11 = vsel %vm247_vm0, 1.0, %v243_v5 }
 0x218   :  { %v159_v6 = vpop.xlane.xlu1 %158 }
 0x219   :  { %310 = vlog2.f32 %v159_v6 }
 0x21a   :  { %v309_v9 = vpop.eup %308  ;;  %312 = vrcp.f32 %v203_v7 }
 0x21b   :  { %314 = vrcp.f32 %v202_v8  ;;  %v166_v13 = vmul.f32 0.6931472, %v309_v9 }
 0x21c   :  { %v246_v10 = vpop.xlane.xlu1 %245 }
 0x21d   :  { %vm248_vm1 = vcmp.lt.f32.partialorder %v246_v10, 1e-06  ;;  %v205_v16 = vmul.f32 %v199_v4, %v166_v13  ;;  %v252_v18 = vmul.f32 %v246_v10, %v166_v13 }
 0x21e   :  { %v250_v12 = vsel %vm248_vm1, 1.0, %v246_v10 }
 0x21f   :  { %316 = vrcp.f32 %v250_v12  ;;  %v254_v26 = vsub.f32 %v238_v24, %v252_v18 }
 0x220   :  { %318 = vrcp.f32 %v249_v11  ;;  %v188_v14 = vpop.xlane.xlu1 %187 }
 0x223   :  { %v311_v15 = vpop.eup %310 }
 0x224   :  { %v164_v17 = vmul.f32 0.6931472, %v311_v15  ;;  %v191_v19 = vpop.xlane.xlu1 %190  ;;  %v313_v23 = vpop.eup %312 }
 0x225   :  { %v207_v20 = vsub.f32 %v191_v19, %v205_v16  ;;  %v315_v25 = vpop.eup %314 }
 0x226   :  { %v204_v21 = vmul.f32 %v196_v2, %v164_v17  ;;  %v251_v22 = vmul.f32 %v243_v5, %v164_v17 }
 0x227   :  { %v211_v28 = vmul.f32 %v313_v23, %v207_v20 }
 0x228   :  { %v206_v27 = vsub.f32 %v188_v14, %v204_v21  ;;  %v235_v29 = vpop.xlane.xlu1 %234 }
 0x229   :  { %v317_v30 = vpop.eup %316  ;;  %v253_v31 = vsub.f32 %v235_v29, %v251_v22  ;;  %v213_v38 = vmul.f32 -1.0, %v211_v28 }
 0x22a   :  { %v319_v32 = vpop.eup %318  ;;  %v258_v33 = vmul.f32 %v317_v30, %v254_v26  ;;  %v209_v34 = vmul.f32 %v315_v25, %v206_v27 }
 0x22b   :  { %v256_v35 = vmul.f32 %v319_v32, %v253_v31 }
 0x22c   :  { %v260_v36 = vmul.f32 -1.0, %v258_v33  ;;  %v212_v37 = vmul.f32 -1.0, %v209_v34 }
 0x22d   :  { %v259_v39 = vmul.f32 -1.0, %v256_v35 }
 0x22e   :  { %v265_v40 = vsel %vm263_vm2, %v213_v38, %v260_v36 }
 0x22f   :  { %268 = vst.msk [vmem:[%s445_s5 + $0x8] sm:$0xff] %vm266_vm3, %v265_v40  ;;  %v264_v41 = vsel %vm263_vm2, %v212_v37, %v259_v39 }
 0x230   :  { %267 = vst.msk [vmem:[%s445_s5] sm:$0xff] %vm266_vm3, %v264_v41 }

</bundles_post_ra>
